<compile_context>
chip_gen: v7x
topology: tpu7x:2x2x1
jax: 0.10.0
libtpu: 0.0.40
codegen_flags: <defaults>
</compile_context>

<pallas_src>
import math

import jax
import jax.numpy as jnp
import numpy as np
from jax.experimental import pallas as pl
from jax.experimental.pallas import tpu as pltpu


# ----------------------------------------------------------------------------
# Fock-basis bookkeeping (host side, mirrors the PyTorch module __init__)
# ----------------------------------------------------------------------------
def hilbert_dim(modes: int, photons: int) -> int:
    return math.comb(modes + photons - 1, photons)


def get_photon_basis(modes: int, photons: int):
    """Occupation tuples of `photons` photons over `modes` modes (qoptcraft order)."""
    if modes == 1:
        return [(photons,)]
    basis = []
    for n in range(photons, -1, -1):
        basis += [(n,) + rest for rest in get_photon_basis(modes - 1, photons - n)]
    return basis


def fock_index_of_image_basis(d1: int, d2: int, add1: int, add2: int) -> np.ndarray:
    """int32[d1*d2]: Fock row index of each image-basis column.

    The passage matrix satisfies P[fock_idx[c], c] = 1 and is zero elsewhere,
    so this vector is a complete (and 4*dim-times smaller) encoding of P.
    """
    modes = d1 + d2 + add1 + add2
    fock_basis = get_photon_basis(modes, 2)
    lookup = {state: k for k, state in enumerate(fock_basis)}
    idx = np.zeros(d1 * d2, dtype=np.int32)
    for i in range(d1):
        for j in range(d2):
            state = [0] * modes
            state[add1 + i] = 1
            state[add1 + d1 + j] = 1
            idx[i * d2 + j] = lookup[tuple(state)]
    return idx


def dense_passage_matrix(d1: int, d2: int, add1: int, add2: int) -> np.ndarray:
    """uint8[dim, d1*d2] — reference only (exactly the PyTorch Passage_matrix)."""
    dim = hilbert_dim(d1 + d2 + add1 + add2, 2)
    idx = fock_index_of_image_basis(d1, d2, add1, add2)
    passage = np.zeros((dim, d1 * d2), dtype=np.uint8)
    passage[idx, np.arange(d1 * d2)] = 1
    return passage


def _round_up(x: int, m: int) -> int:
    return ((x + m - 1) // m) * m


# ----------------------------------------------------------------------------
# Pallas kernel: out[tm, tn] tile of  P @ X @ P^T
# ----------------------------------------------------------------------------
def _basis_change_density_kernel(idx_row_ref, idx_col_ref, x_ref, o_ref, t_ref):
    # idx_row_ref : (1, N)   int32  -- Fock row index of each image column (-1 padded)
    # idx_col_ref : (N, 1)   int32  -- same vector, column layout
    # x_ref       : (N, N)   f32    -- (zero-padded) image-basis density matrix
    # o_ref       : (tm, tn) f32    -- output tile of the Fock-basis density matrix
    # t_ref       : (tm, N)  f32    -- scratch: T = P_rows @ X, reused across column tiles
    i = pl.program_id(0)          # output row-tile index  ("parallel")
    j = pl.program_id(1)          # output col-tile index  ("arbitrary", innermost)
    tm, tn = o_ref.shape
    n = x_ref.shape[0]

    @pl.when(j == 0)
    def _():
        # One-hot rows of P for this row tile, built on the fly from iota:
        # no (dim x N) passage matrix is ever read from HBM.
        rows = i * tm + jax.lax.broadcasted_iota(jnp.int32, (tm, n), 0)
        p_rows = (idx_row_ref[...] == rows).astype(jnp.float32)          # (tm, N)
        t_ref[...] = jnp.dot(p_rows, x_ref[...],
                             preferred_element_type=jnp.float32)         # (tm, N)

    # One-hot columns of P^T built directly in (K, N_out) layout -> plain
    # (M,K)@(K,N) MXU matmul, no transpose.
    cols = j * tn + jax.lax.broadcasted_iota(jnp.int32, (n, tn), 1)
    p_cols = (idx_col_ref[...] == cols).astype(jnp.float32)              # (N, tn)
    # NOTE: both matmuls are one-hot selections, so the result is numerically
    # exact regardless of the MXU's f32 pass decomposition.
    o_ref[...] = jnp.dot(t_ref[...], p_cols,
                         preferred_element_type=jnp.float32)             # (tm, tn)


def basis_change_density(fock_idx, input_state, dim, *, tm=128, tn=512):
    """out = P @ input_state @ P^T, with P encoded by `fock_idx` (one 1 per column)."""
    fock_idx = np.asarray(fock_idx, dtype=np.int32)
    n = int(fock_idx.shape[0])
    x = jnp.asarray(input_state, dtype=jnp.float32)
    # NOTE: like the PyTorch `.to(torch.float32)` path, complex inputs are not supported.
    assert x.shape == (n, n), f"expected image-basis density of shape {(n, n)}, got {x.shape}"

    # Pad the image dimension to a multiple of 128 (lane-dense vregs, aligned MXU K).
    # Padded X rows/cols are zero and the -1 index sentinel never matches any
    # iota value, so the padded one-hot columns are all-zero -> exact result.
    n_pad = max(128, _round_up(n, 128))
    if n_pad != n:
        x = jnp.pad(x, ((0, n_pad - n), (0, n_pad - n)))
    idx_np = np.full((n_pad,), -1, dtype=np.int32)
    idx_np[:n] = fock_idx
    idx_row = jnp.asarray(idx_np.reshape(1, n_pad))
    idx_col = jnp.asarray(idx_np.reshape(n_pad, 1))

    # Clamp tile sizes to the (rounded-up) Fock dimension; keep alignment.
    tm = max(8, min(tm, _round_up(dim, 8)))
    tn = max(128, min(tn, _round_up(dim, 128)))
    assert tm % 8 == 0 and tn % 128 == 0, "tm must be a multiple of 8, tn of 128"

    grid = (pl.cdiv(dim, tm), pl.cdiv(dim, tn))

    # Right-size the scoped VMEM request (v7x has only 64 MiB per TensorCore).
    f32 = 4
    vmem_need = (
        n_pad * n_pad * f32          # resident X block
        + tm * n_pad * f32           # T scratch
        + 2 * tm * tn * f32          # double-buffered output tile
        + tm * n_pad * f32           # p_rows temporary
        + n_pad * tn * f32           # p_cols temporary
        + 2 * n_pad * 128 * f32      # index blocks (sublane/lane padded)
    )
    vmem_limit = int(min(max(2 * vmem_need, 16 * 1024 * 1024), 48 * 1024 * 1024))

    out = pl.pallas_call(
        _basis_change_density_kernel,
        # True (dim, dim) output: edge tiles get masked stores, no host-side slice.
        out_shape=jax.ShapeDtypeStruct((dim, dim), jnp.float32),
        grid_spec=pltpu.PrefetchScalarGridSpec(
            num_scalar_prefetch=0,
            grid=grid,
            in_specs=[
                # Tiny operands: full-array blocks, constant index maps -> DMA'd once.
                pl.BlockSpec((1, n_pad), lambda i, j: (0, 0)),
                pl.BlockSpec((n_pad, 1), lambda i, j: (0, 0)),
                pl.BlockSpec((n_pad, n_pad), lambda i, j: (0, 0)),
            ],
            out_specs=pl.BlockSpec((tm, tn), lambda i, j: (i, j)),
            scratch_shapes=[pltpu.VMEM((tm, n_pad), jnp.float32)],
        ),
        compiler_params=pltpu.CompilerParams(
            # Row tiles are independent -> "parallel" (v7x megacore splits them);
            # column tiles reuse the per-row-tile scratch -> "arbitrary", innermost.
            dimension_semantics=("parallel", "arbitrary"),
            vmem_limit_bytes=vmem_limit,
        ),
    )(idx_row, idx_col, x)

    return out


class BasisChangeImageToLargerFockDensity:
    """JAX/Pallas equivalent of the PyTorch Basis_Change_Image_to_larger_Fock_density."""

    def __init__(self, d1, d2, add1, add2, *, tm=128, tn=512):
        self.dim = hilbert_dim(d1 + d2 + add1 + add2, 2)
        self.n = d1 * d2
        self.fock_idx = fock_index_of_image_basis(d1, d2, add1, add2)  # np.int32[n]
        self.tm, self.tn = tm, tn
        # TODO(synk): for very large d1*d2 (image basis > ~2k) the resident X block
        # should itself be tiled along the contraction axis; not needed at QML sizes.

    def __call__(self, input_state):
        return basis_change_density(self.fock_idx, input_state, self.dim,
                                     tm=self.tm, tn=self.tn)


# ----------------------------------------------------------------------------
# Demo / self-test
# ----------------------------------------------------------------------------
if __name__ == "__main__":
    d1, d2, add1, add2 = 8, 8, 2, 2            # N = 64 image basis, dim = C(21,2) = 210
    layer = BasisChangeImageToLargerFockDensity(d1, d2, add1, add2)

    n = d1 * d2
    key = jax.random.PRNGKey(0)
    a = jax.random.normal(key, (n, n), dtype=jnp.float32)
    rho = a @ a.T                               # symmetric "density-like" matrix
    rho = rho / jnp.trace(rho)

    out = jax.block_until_ready(layer(rho))

    # Reference: dense passage matrix exactly as built by the PyTorch module.
    P = dense_passage_matrix(d1, d2, add1, add2).astype(np.float32)
    ref = P @ np.asarray(rho) @ P.T
    assert out.shape == (layer.dim, layer.dim), out.shape
    np.testing.assert_allclose(np.asarray(out), ref, rtol=1e-5, atol=1e-5)

    print("KERNEL_OK")
</pallas_src>

<mosaic_0001>
module attributes {stable_mosaic.version = 11 : i64} {
  func.func @_basis_change_density_kernel(%arg0: i32, %arg1: i32, %arg2: memref<1x128xi32, #tpu.memory_space<vmem>>, %arg3: memref<128x1xi32, #tpu.memory_space<vmem>>, %arg4: memref<128x128xf32, #tpu.memory_space<vmem>>, %arg5: memref<128x256xf32, #tpu.memory_space<vmem>>, %arg6: memref<128x128xf32, #tpu.memory_space<vmem>>) attributes {dimension_semantics = [#tpu.dimension_semantics<parallel>, #tpu.dimension_semantics<arbitrary>], iteration_bounds = array<i64: 2, 1>, scalar_prefetch = 0 : i64, scratch_operands = 1 : i64, tpu.core_type = #tpu.core_type<tc>, window_params = [{pipeline_mode = #tpu.pipeline_mode<synchronous>, transform_indices = @transform_0, window_bounds = array<i64: 1, 128>}, {pipeline_mode = #tpu.pipeline_mode<synchronous>, transform_indices = @transform_1, window_bounds = array<i64: 128, 1>}, {pipeline_mode = #tpu.pipeline_mode<synchronous>, transform_indices = @transform_2, window_bounds = array<i64: 128, 128>}, {transform_indices = @transform_3, window_bounds = array<i64: 128, 256>}]} {
    %c0_i32 = arith.constant 0 : i32
    %0 = arith.cmpi eq, %arg1, %c0_i32 : i32
    %1 = arith.extui %0 : i1 to i32
    %c0_i32_0 = arith.constant 0 : i32
    %2 = arith.cmpi ne, %1, %c0_i32_0 : i32
    scf.if %2 {
      %c128_i32 = arith.constant 128 : i32
      %15 = arith.muli %arg0, %c128_i32 : i32
      %16 = tpu.iota {dimensions = array<i32: 0>} : vector<128x128xi32>
      %17 = vector.broadcast %15 : i32 to vector<128x128xi32>
      %18 = arith.addi %17, %16 : vector<128x128xi32>
      %c0_6 = arith.constant 0 : index
      %c0_7 = arith.constant 0 : index
      %19 = vector.load %arg2[%c0_6, %c0_7] : memref<1x128xi32, #tpu.memory_space<vmem>>, vector<1x128xi32>
      %20 = vector.broadcast %19 : vector<1x128xi32> to vector<128x128xi32>
      %21 = arith.cmpi eq, %20, %18 : vector<128x128xi32>
      %22 = arith.extui %21 : vector<128x128xi1> to vector<128x128xi32>
      %23 = arith.sitofp %22 : vector<128x128xi32> to vector<128x128xf32>
      %c0_8 = arith.constant 0 : index
      %c0_9 = arith.constant 0 : index
      %24 = vector.load %arg4[%c0_8, %c0_9] : memref<128x128xf32, #tpu.memory_space<vmem>>, vector<128x128xf32>
      %cst_10 = arith.constant dense<0.000000e+00> : vector<128x128xf32>
      %25 = tpu.matmul %23, %24, %cst_10 {dimension_numbers = #tpu.dot_dimension_numbers<[1], [0], [0], [1], [0, 0, 1, 1], [], []>} : vector<128x128xf32>, vector<128x128xf32>, vector<128x128xf32> -> vector<128x128xf32>
      %c0_11 = arith.constant 0 : index
      %c0_12 = arith.constant 0 : index
      %26 = vector.load %arg6[%c0_11, %c0_12] : memref<128x128xf32, #tpu.memory_space<vmem>>, vector<128x128xf32>
      tpu.vector_store %arg6[%c0_11, %c0_12], %25 {strides = array<i32>} : memref<128x128xf32, #tpu.memory_space<vmem>>, vector<128x128xf32>,
    } else {
    }
    %c256_i32 = arith.constant 256 : i32
    %3 = arith.muli %arg1, %c256_i32 : i32
    %4 = tpu.iota {dimensions = array<i32: 1>} : vector<128x256xi32>
    %5 = vector.broadcast %3 : i32 to vector<128x256xi32>
    %6 = arith.addi %5, %4 : vector<128x256xi32>
    %c0 = arith.constant 0 : index
    %c0_1 = arith.constant 0 : index
    %7 = vector.load %arg3[%c0, %c0_1] : memref<128x1xi32, #tpu.memory_space<vmem>>, vector<128x1xi32>
    %8 = vector.broadcast %7 : vector<128x1xi32> to vector<128x256xi32>
    %9 = arith.cmpi eq, %8, %6 : vector<128x256xi32>
    %10 = arith.extui %9 : vector<128x256xi1> to vector<128x256xi32>
    %11 = arith.sitofp %10 : vector<128x256xi32> to vector<128x256xf32>
    %c0_2 = arith.constant 0 : index
    %c0_3 = arith.constant 0 : index
    %12 = vector.load %arg6[%c0_2, %c0_3] : memref<128x128xf32, #tpu.memory_space<vmem>>, vector<128x128xf32>
    %cst = arith.constant dense<0.000000e+00> : vector<128x256xf32>
    %13 = tpu.matmul %12, %11, %cst {dimension_numbers = #tpu.dot_dimension_numbers<[1], [0], [0], [1], [0, 0, 1, 1], [], []>} : vector<128x128xf32>, vector<128x256xf32>, vector<128x256xf32> -> vector<128x256xf32>
    %c0_4 = arith.constant 0 : index
    %c0_5 = arith.constant 0 : index
    %14 = vector.load %arg5[%c0_4, %c0_5] : memref<128x256xf32, #tpu.memory_space<vmem>>, vector<128x256xf32>
    tpu.vector_store %arg5[%c0_4, %c0_5], %13 {strides = array<i32>} : memref<128x256xf32, #tpu.memory_space<vmem>>, vector<128x256xf32>,
    return
  }
  func.func @transform_0(%arg0: i32, %arg1: i32) -> (i32, i32) {
    %c0_i32 = arith.constant 0 : i32
    %c0_i32_0 = arith.constant 0 : i32
    %c0_i32_1 = arith.constant 0 : i32
    return %c0_i32, %c0_i32_0 : i32, i32
  }
  func.func @transform_1(%arg0: i32, %arg1: i32) -> (i32, i32) {
    %c0_i32 = arith.constant 0 : i32
    %c0_i32_0 = arith.constant 0 : i32
    %c0_i32_1 = arith.constant 0 : i32
    return %c0_i32, %c0_i32_0 : i32, i32
  }
  func.func @transform_2(%arg0: i32, %arg1: i32) -> (i32, i32) {
    %c0_i32 = arith.constant 0 : i32
    %c0_i32_0 = arith.constant 0 : i32
    %c0_i32_1 = arith.constant 0 : i32
    return %c0_i32, %c0_i32_0 : i32, i32
  }
  func.func @transform_3(%arg0: i32, %arg1: i32) -> (i32, i32) {
    %c0_i32 = arith.constant 0 : i32
    return %arg0, %arg1 : i32, i32
  }
}

</mosaic_0001>

<bundles_post_ra>
// kernel: tpu_custom_call.1
= control target key start
LH: loop header
LB: loop body
LE: loop exit
PB: predicated region body
PF: predicated region fallthrough
CT: control target
= control target key end

     0   :  { %8 = vsyncpa [#allocation4], 0  ;;  %s1771_s0 = inlined_call_operand.vmem [shape: s32[1,128], index: 0, kind: input, shape index: {}]   ;;  %s1772_s1 = inlined_call_operand.vmem [shape: s32[128,1], index: 1, kind: input, shape index: {}]   ;;  %s1773_s2 = inlined_call_operand.vmem [shape: f32[128,128], index: 2, kind: input, shape index: {}]   ;;  %s1774_s3 = inlined_call_operand.hbm [shape: f32[210,210], index: 3, kind: output, shape index: {}]  }
   0x1   :  { %10 = vsyncpa [#allocation4 + $0x1], 0  ;;  %s1354_s12 = smov 0   ;;  %s1356_s13 = smov 0  }
   0x2   :  { %s1358_s14 = smov 0   ;;  %s1360_s15 = smov 0  }
   0x3   :  { %s1362_s16 = smov 0   ;;  %s1364_s17 = smov 0  }
   0x4 LB: > { %s900_s18 = sadd.s32 4294967295, %s1325_s17   ;;  %s901_s19 = sadd.s32 4294967294, %s1325_s17   ;;  %s1325_s17 = sphi %s1364_s17, %s16_s17   ;;  %s1321_s16 = sphi %s1362_s16, %s1781_s16   ;;  %s1317_s15 = sphi %s1360_s15, %s1780_s15   ;;  %s1313_s14 = sphi %s1358_s14, %s1779_s14   ;;  %s1309_s13 = sphi %s1356_s13, %s1778_s13   ;;  %s1305_s12 = sphi %s1354_s12, %s1777_s12  }
   0x5   : > { %s28_s20 = sadd.s32 1, %s1321_s16  ;;  %s100_s21 = sadd.s32 1, %s1313_s14 }
   0x6   : > { %p30_p0 = scmp.ge.s32.totalorder %s28_s20, 2  ;;  %p110_p1 = scmp.ne.s32.totalorder %s1313_s14, %s1309_s13 }
   0x7   : > { %p111_p2 = scmp.eq.s32.totalorder %s900_s18, 1  ;;  %p116_p3 = scmp.ne.s32.totalorder %s1309_s13, %s1305_s12 }
   0x8   : > { %s1783_s20 = smov (%p30_p0, %s28_s20), 0  ;;  %p117_p5 = scmp.eq.s32.totalorder %s901_s19, 1 }
   0x9   : > { %p1394_p4 = por %p111_p2, %p110_p1  ;;  %s95_s23 = ssub.s32 %s1321_s16, %s1783_s20 }
   0xa   : > { %p903_p6 = scmp.ge.s32.totalorder %s1325_s17, 1  ;;  %p98_p7 = scmp.eq.s32.totalorder %s95_s23, 0 }
   0xb   : > { %p1401_p8 = por %p117_p5, %p116_p3  ;;  %p144_p9 = scmp.lt.s32.totalorder %s1325_s17, 3 }
   0xc   : > { %s1407_s25 = scalar_select %p98_p7, %s1313_s14, %s100_s21  }
   0xd   : > { %p145_p10 = pnand %p903_p6, %p144_p9 }
   0xe   : > { %v262_v0 = vld [vmem:[%s1773_s2] sm:$0xff] (!%p145_p10)  ;;  %v263_v1 = vld [vmem:[%s1773_s2 + $0x8] sm:$0xff] (!%p145_p10)  ;;  %v264_v2 = vld [vmem:[%s1773_s2 + $0x10] sm:$0xff] (!%p145_p10)  ;;  %s905_s5 = sshll.u32 (!%p145_p10), %s1317_s15, 7  ;;  %v175_v3 = vlaneseq (!%p145_p10)  ;;  %v1327_v7 = vmov (!%p145_p10), 0   ;;  %v1328_v19 = vmov (!%p145_p10), 1.0  }
   0xf   : > { %148 = sbr.rel (%p145_p10) target bundleno = 556 (0x22c), region = 32  ;;  %v1105_v4 = vpack.c.bf16 (!%p145_p10), %v263_v1, %v262_v0  ;;  %v265_v5 = vld [vmem:[%s1773_s2 + $0x18] sm:$0xff] (!%p145_p10)  ;;  %v1422_v6 = vstv (!%p145_p10), %s905_s5  ;;  %1245 = vset.pattern.permute.xlu0 (!%p145_p10), %v1327_v7  ;;  %1246 = vset.pattern.permute.xlu1 (!%p145_p10), %v1327_v7  ;;  %v266_v9 = vld [vmem:[%s1773_s2 + $0x20] sm:$0xff] (!%p145_p10)  ;;  %v267_v10 = vld [vmem:[%s1773_s2 + $0x28] sm:$0xff] (!%p145_p10)  ;;  %s160_s23 = sand.u32 (!%p145_p10), 1, %s1309_s13  }
  0x10   : > { %v1109_v8 = vpack.c.bf16 (!%p145_p10), %v265_v5, %v264_v2  ;;  %v1431_v11 = vshrl.u32 (!%p145_p10), %v175_v3, 7  ;;  %v1113_v13 = vpack.c.bf16 (!%p145_p10), %v267_v10, %v266_v9  ;;  %v268_v14 = vld [vmem:[%s1773_s2 + $0x30] sm:$0xff] (!%p145_p10)  ;;  %v1441_v15 = vld [vmem:[%s1771_s0] ss:$0 sm:$0xff] (!%p145_p10)  ;;  %v269_v16 = vld [vmem:[%s1773_s2 + $0x38] sm:$0xff] (!%p145_p10)  ;;  %s904_s26 = sshll.u32 (!%p145_p10), %s160_s23, 8 }
  0x11   : > { %1106 = vmatprep.subr.bf16.mxu0 (!%p145_p10), %v1105_v4  ;;  %v446_v17 = vld [vmem:[%s1772_s1] sm:$0xff] (!%p145_p10)  ;;  %v448_v18 = vld [vmem:[%s1772_s1 + $0x10] sm:$0xff] (!%p145_p10)  ;;  %v447_v20 = vld [vmem:[%s1772_s1 + $0x8] sm:$0xff] (!%p145_p10)  ;;  %v1117_v21 = vpack.c.bf16 (!%p145_p10), %v269_v16, %v268_v14  ;;  %s1669_s27 = scalar_lea.vmem (!%p145_p10), [#allocation3], %s904_s26  ;;  %s1705_s28 = scalar_lea.sflag (!%p145_p10), [#allocation4], %s160_s23 }
  0x12   : > { %1108 = vmatpush3.bf16.msra.mxu0 (!%p145_p10), %v1105_v4  ;;  %v193_v12 = vadd.s32 (!%p145_p10), %v1422_v6, %v1431_v11  ;;  %463 = vperm.xlu0 (!%p145_p10), %1245, %v446_v17   ;;  %v449_v22 = vld [vmem:[%s1772_s1 + $0x18] sm:$0xff] (!%p145_p10)  ;;  %v270_v23 = vld [vmem:[%s1773_s2 + $0x40] sm:$0xff] (!%p145_p10)  ;;  %v271_v24 = vld [vmem:[%s1773_s2 + $0x48] sm:$0xff] (!%p145_p10)  ;;  %v177_v40 = vadd.s32 (!%p145_p10), 8, %v1431_v11  ;;  %v178_v43 = vadd.s32 (!%p145_p10), 16, %v1431_v11  ;;  %v179_v46 = vadd.s32 (!%p145_p10), 24, %v1431_v11 }
  0x13   : > { %1110 = vmatprep.subr.bf16.mxu0 (!%p145_p10), %v1109_v8  ;;  %469 = vperm.xlu1 (!%p145_p10), %1246, %v448_v18   ;;  %v450_v25 = vld [vmem:[%s1772_s1 + $0x20] sm:$0xff] (!%p145_p10)  ;;  %v1121_v26 = vpack.c.bf16 (!%p145_p10), %v271_v24, %v270_v23  ;;  %v451_v27 = vld [vmem:[%s1772_s1 + $0x28] sm:$0xff] (!%p145_p10)  ;;  %v272_v28 = vld [vmem:[%s1773_s2 + $0x50] sm:$0xff] (!%p145_p10)  ;;  %v180_v49 = vadd.s32 (!%p145_p10), 32, %v1431_v11  ;;  %v181_v52 = vadd.s32 (!%p145_p10), 40, %v1431_v11  ;;  %v182_v55 = vadd.s32 (!%p145_p10), 48, %v1431_v11 }
  0x14   : > { %vm214_vm0 = vcmp.eq.s32.totalorder (!%p145_p10), %v1441_v15, %v193_v12  ;;  %v273_v29 = vld [vmem:[%s1773_s2 + $0x58] sm:$0xff] (!%p145_p10)  ;;  %v452_v30 = vld [vmem:[%s1772_s1 + $0x30] sm:$0xff] (!%p145_p10)  ;;  %v274_v33 = vld [vmem:[%s1773_s2 + $0x60] sm:$0xff] (!%p145_p10)  ;;  %v194_v45 = vadd.s32 (!%p145_p10), %v1422_v6, %v177_v40  ;;  %v195_v48 = vadd.s32 (!%p145_p10), %v1422_v6, %v178_v43  ;;  %v196_v51 = vadd.s32 (!%p145_p10), %v1422_v6, %v179_v46 }
  0x15   : > { %1081 = vmatprep.mubr.msk.f32.mxu0 (!%p145_p10), %vm214_vm0, %v1328_v19  ;;  %v1125_v31 = vpack.c.bf16 (!%p145_p10), %v273_v29, %v272_v28  ;;  %v453_v32 = vld [vmem:[%s1772_s1 + $0x38] sm:$0xff] (!%p145_p10)  ;;  %v275_v34 = vld [vmem:[%s1773_s2 + $0x68] sm:$0xff] (!%p145_p10)  ;;  %v454_v35 = vld [vmem:[%s1772_s1 + $0x40] sm:$0xff] (!%p145_p10)  ;;  %v197_v54 = vadd.s32 (!%p145_p10), %v1422_v6, %v180_v49  ;;  %v198_v57 = vadd.s32 (!%p145_p10), %v1422_v6, %v181_v52  ;;  %v183_v58 = vadd.s32 (!%p145_p10), 56, %v1431_v11 }
  0x16   : > { %1112 = vmatpush3.bf16.msra.mxu0 %v1109_v8  ;;  %466 = vperm.xlu0 %1245, %v447_v20   ;;  %v1129_v36 = vpack.c.bf16 %v275_v34, %v274_v33  ;;  %v455_v37 = vld [vmem:[%s1772_s1 + $0x48] sm:$0xff]  ;;  %v276_v38 = vld [vmem:[%s1773_s2 + $0x70] sm:$0xff]  ;;  %v277_v39 = vld [vmem:[%s1773_s2 + $0x78] sm:$0xff]  ;;  %vm215_vm1 = vcmp.eq.s32.totalorder %v1441_v15, %v194_v45  ;;  %vm216_vm2 = vcmp.eq.s32.totalorder %v1441_v15, %v195_v48  ;;  %v184_v60 = vadd.s32 64, %v1431_v11  ;;  %s1004_s29 = sshll.u32 (%p1394_p4), %s1317_s15, 4 }
  0x17   : > { %1114 = vmatprep.subr.bf16.mxu0 %v1113_v13  ;;  %472 = vperm.xlu1 %1246, %v449_v22   ;;  %v456_v41 = vld [vmem:[%s1772_s1 + $0x50] sm:$0xff]  ;;  %v1133_v42 = vpack.c.bf16 %v277_v39, %v276_v38  ;;  %v457_v44 = vld [vmem:[%s1772_s1 + $0x58] sm:$0xff]  ;;  %v458_v47 = vld [vmem:[%s1772_s1 + $0x60] sm:$0xff]  ;;  %vm217_vm3 = vcmp.eq.s32.totalorder %v1441_v15, %v196_v51  ;;  %vm218_vm4 = vcmp.eq.s32.totalorder %v1441_v15, %v197_v54  ;;  %v185_v62 = vadd.s32 72, %v1431_v11  ;;  %s825_s30 = ssub.s32 (%p1394_p4), 27, %s1004_s29 }
  0x18   : > { %v459_v50 = vld [vmem:[%s1772_s1 + $0x68] sm:$0xff]  ;;  %v460_v53 = vld [vmem:[%s1772_s1 + $0x70] sm:$0xff]  ;;  %v461_v56 = vld [vmem:[%s1772_s1 + $0x78] sm:$0xff]  ;;  %v199_v59 = vadd.s32 %v1422_v6, %v182_v55  ;;  %vm219_vm5 = vcmp.eq.s32.totalorder %v1441_v15, %v198_v57  ;;  %v200_v61 = vadd.s32 %v1422_v6, %v183_v58  ;;  %v201_v63 = vadd.s32 %v1422_v6, %v184_v60  ;;  %p826_p11 = scmp.lt.s32.totalorder (%p1394_p4), %s825_s30, 16 }
  0x19   : > { %v186_v0 = vadd.s32 80, %v1431_v11  ;;  %v202_v1 = vadd.s32 %v1422_v6, %v185_v62  ;;  %v187_v2 = vadd.s32 88, %v1431_v11  ;;  %v188_v5 = vadd.s32 96, %v1431_v11 }
  0x1a   : > { %1116 = vmatpush3.bf16.msra.mxu0 %v1113_v13  ;;  %475 = vperm.xlu0 %1245, %v450_v25   ;;  %vm220_vm6 = vcmp.eq.s32.totalorder %v1441_v15, %v199_v59  ;;  %vm221_vm7 = vcmp.eq.s32.totalorder %v1441_v15, %v200_v61  ;;  %vm222_vm8 = vcmp.eq.s32.totalorder %v1441_v15, %v201_v63  ;;  %v189_v8 = vadd.s32 104, %v1431_v11 }
  0x1b   : > { %1118 = vmatprep.subr.bf16.mxu0 %v1117_v21  ;;  %478 = vperm.xlu1 %1246, %v451_v27   ;;  %v203_v4 = vadd.s32 %v1422_v6, %v186_v0  ;;  %vm223_vm9 = vcmp.eq.s32.totalorder %v1441_v15, %v202_v1  ;;  %v204_v7 = vadd.s32 %v1422_v6, %v187_v2  ;;  %v190_v10 = vadd.s32 112, %v1431_v11 }
  0x1c   : > { %v205_v9 = vadd.s32 %v1422_v6, %v188_v5  ;;  %v206_v12 = vadd.s32 %v1422_v6, %v189_v8  ;;  %v191_v13 = vadd.s32 120, %v1431_v11  ;;  %v1329_v11 = vmov 0.0  }
  0x1d   : > { %vm224_vm10 = vcmp.eq.s32.totalorder %v1441_v15, %v203_v4  ;;  %vm225_vm11 = vcmp.eq.s32.totalorder %v1441_v15, %v204_v7  ;;  %v207_v14 = vadd.s32 %v1422_v6, %v190_v10  ;;  %710 = vmatprep.mubr.f32.mxu1 %v1329_v11  ;;  %v1583_v17 = vand.u32 127, %v175_v3 }
  0x1e   : > { %1120 = vmatpush3.bf16.msra.mxu0 %v1117_v21  ;;  %481 = vperm.xlu0 %1245, %v452_v30   ;;  %vm226_vm12 = vcmp.eq.s32.totalorder %v1441_v15, %v205_v9  ;;  %vm227_vm13 = vcmp.eq.s32.totalorder %v1441_v15, %v206_v12  ;;  %v208_v16 = vadd.s32 %v1422_v6, %v191_v13  ;;  %v1330_v3 = vmov 1.0|1.0  }
  0x1f   : > { %1122 = vmatprep.subr.bf16.mxu0 %v1121_v26  ;;  %484 = vperm.xlu1 %1246, %v453_v32   ;;  %vm228_vm14 = vcmp.eq.s32.totalorder %v1441_v15, %v207_v14  ;;  %v1586_v6 = vadd.s32 128, %v1583_v17 }
  0x20   : > { %vm229_vm15 = vcmp.eq.s32.totalorder %v1441_v15, %v208_v16 }
  0x22   : > { %1124 = vmatpush3.bf16.msra.mxu0 %v1121_v26  ;;  %487 = vperm.xlu0 %1245, %v454_v35  }
  0x23   : > { %1126 = vmatprep.subr.bf16.mxu0 %v1125_v31  ;;  %490 = vperm.xlu1 %1246, %v455_v37  }
  0x26   : > { %1128 = vmatpush3.bf16.msra.mxu0 %v1125_v31  ;;  %493 = vperm.xlu0 %1245, %v456_v41  }
  0x27   : > { %1130 = vmatprep.subr.bf16.mxu0 %v1129_v36  ;;  %496 = vperm.xlu1 %1246, %v457_v44  }
  0x2a   : > { %1132 = vmatpush3.bf16.msra.mxu0 %v1129_v36  ;;  %499 = vperm.xlu0 %1245, %v458_v47  }
  0x2b   : > { %1134 = vmatprep.subr.bf16.mxu0 %v1133_v42  ;;  %502 = vperm.xlu1 %1246, %v459_v50  }
  0x2e   : > { %1136 = vmatpush3.bf16.msra.mxu0 %v1133_v42  ;;  %505 = vperm.xlu0 %1245, %v460_v53  }
  0x2f   : > { %508 = vperm.xlu1 %1246, %v461_v56  }
  0x31   : > { %1082 = vmatmul.mubr.msk.f32.vlgmr.msra.gmra.mrb[0].mxu0 %vm215_vm1, %v1328_v19 }
  0x32   : > { %1084 = vmatprep.mubr.msk.f32.mxu0 %vm216_vm2, %v1328_v19 }
  0x35   : > { %1085 = vmatmul.mubr.msk.f32.gmra.mrb[2].mxu0 %vm217_vm3, %v1328_v19 }
  0x36   : > { %1087 = vmatprep.mubr.msk.f32.mxu0 %vm218_vm4, %v1328_v19 }
  0x39   : > { %1088 = vmatmul.mubr.msk.f32.gmra.mrb[4].mxu0 %vm219_vm5, %v1328_v19 }
  0x3a   : > { %1090 = vmatprep.mubr.msk.f32.mxu0 %vm220_vm6, %v1328_v19 }
  0x3d   : > { %1091 = vmatmul.mubr.msk.f32.gmra.mrb[6].mxu0 %vm221_vm7, %v1328_v19 }
  0x3e   : > { %1093 = vmatprep.mubr.msk.f32.mxu0 %vm222_vm8, %v1328_v19 }
  0x41   : > { %1094 = vmatmul.mubr.msk.f32.gmra.mrb[8].mxu0 %vm223_vm9, %v1328_v19 }
  0x42   : > { %1096 = vmatprep.mubr.msk.f32.mxu0 %vm224_vm10, %v1328_v19 }
  0x45   : > { %1097 = vmatmul.mubr.msk.f32.gmra.mrb[10].mxu0 %vm225_vm11, %v1328_v19 }
  0x46   : > { %1099 = vmatprep.mubr.msk.f32.mxu0 %vm226_vm12, %v1328_v19 }
  0x49   : > { %1100 = vmatmul.mubr.msk.f32.gmra.mrb[12].mxu0 %vm227_vm13, %v1328_v19 }
  0x4a   : > { %1102 = vmatprep.mubr.msk.f32.mxu0 %vm228_vm14, %v1328_v19 }
  0x4d   : > { %1103 = vmatmul.mubr.msk.f32.gmra.mrb[14].mxu0 %vm229_vm15, %v1328_v19 }
  0x4e   : > { %686 = vmatprep.mubr.f32.mxu0 %v1329_v11 }
  0x91   : > { %v464_v18 = vpop.permute.xlu0 %463 }
  0x92   : > { %v470_v20 = vpop.permute.xlu1 %469  ;;  %vm511_vm0 = vcmp.eq.s32.totalorder %v464_v18, %v1586_v6  ;;  %vm510_vm1 = vcmp.eq.s32.totalorder %v464_v18, %v1583_v17 }
  0x93   : > { %vm515_vm2 = vcmp.eq.s32.totalorder %v470_v20, %v1586_v6  ;;  %vm514_vm5 = vcmp.eq.s32.totalorder %v470_v20, %v1583_v17 }
  0x95   : > { %v467_v15 = vpop.permute.xlu0 %466 }
  0x96   : > { %vm512_vm3 = vcmp.eq.s32.totalorder %v467_v15, %v1583_v17  ;;  %vm513_vm4 = vcmp.eq.s32.totalorder %v467_v15, %v1586_v6  ;;  %v473_v19 = vpop.permute.xlu1 %472 }
  0x97   : > { %vm1137_vm6 = vmpackc.low %vm513_vm4, %vm511_vm0  ;;  %vm516_vm7 = vcmp.eq.s32.totalorder %v473_v19, %v1583_v17  ;;  %vm517_vm8 = vcmp.eq.s32.totalorder %v473_v19, %v1586_v6 }
  0x98   : > { %vm1139_vm9 = vmpackc.low %vm512_vm3, %vm510_vm1  ;;  %1138 = vmatprep.subr.msk.bf16.mxu0 %vm1137_vm6, %v1330_v3  ;;  %1169 = vmatprep.subr.msk.bf16.mxu1 %vm1137_vm6, %v1330_v3 }
  0x99   : > { %vm1141_vm10 = vmpackc.low %vm517_vm8, %vm515_vm2  ;;  %1140 = vmatpush1.bf16.msk.msra.mxu0 %vm1139_vm9, %v1330_v3  ;;  %1177 = vmatpush1.bf16.msk.msra.mxu1 %vm1139_vm9, %v1330_v3  ;;  %v476_v21 = vpop.permute.xlu0 %475 }
  0x9a   : > { %vm1143_vm11 = vmpackc.low %vm516_vm7, %vm514_vm5  ;;  %1142 = vmatprep.subr.msk.bf16.mxu0 %vm1141_vm10, %v1330_v3  ;;  %1170 = vmatprep.subr.msk.bf16.mxu1 %vm1141_vm10, %v1330_v3  ;;  %v479_v22 = vpop.permute.xlu1 %478  ;;  %vm519_vm12 = vcmp.eq.s32.totalorder %v476_v21, %v1586_v6  ;;  %vm518_vm15 = vcmp.eq.s32.totalorder %v476_v21, %v1583_v17 }
  0x9b   : > { %vm520_vm13 = vcmp.eq.s32.totalorder %v479_v22, %v1583_v17  ;;  %vm521_vm14 = vcmp.eq.s32.totalorder %v479_v22, %v1586_v6 }
  0x9c   : > { %vm1145_vm0 = vmpackc.low %vm521_vm14, %vm519_vm12 }
  0x9d   : > { %1144 = vmatpush1.bf16.msk.msra.mxu0 %vm1143_vm11, %v1330_v3  ;;  %1178 = vmatpush1.bf16.msk.msra.mxu1 %vm1143_vm11, %v1330_v3  ;;  %v482_v23 = vpop.permute.xlu0 %481  ;;  %vm1147_vm1 = vmpackc.low %vm520_vm13, %vm518_vm15 }
  0x9e   : > { %1146 = vmatprep.subr.msk.bf16.mxu0 %vm1145_vm0, %v1330_v3  ;;  %1171 = vmatprep.subr.msk.bf16.mxu1 %vm1145_vm0, %v1330_v3  ;;  %v485_v24 = vpop.permute.xlu1 %484  ;;  %vm523_vm2 = vcmp.eq.s32.totalorder %v482_v23, %v1586_v6  ;;  %vm522_vm5 = vcmp.eq.s32.totalorder %v482_v23, %v1583_v17 }
  0x9f   : > { %vm524_vm3 = vcmp.eq.s32.totalorder %v485_v24, %v1583_v17  ;;  %vm525_vm4 = vcmp.eq.s32.totalorder %v485_v24, %v1586_v6 }
  0xa0   : > { %vm1149_vm6 = vmpackc.low %vm525_vm4, %vm523_vm2 }
  0xa1   : > { %1148 = vmatpush1.bf16.msk.msra.mxu0 %vm1147_vm1, %v1330_v3  ;;  %1179 = vmatpush1.bf16.msk.msra.mxu1 %vm1147_vm1, %v1330_v3  ;;  %v488_v25 = vpop.permute.xlu0 %487  ;;  %vm1151_vm7 = vmpackc.low %vm524_vm3, %vm522_vm5 }
  0xa2   : > { %1150 = vmatprep.subr.msk.bf16.mxu0 %vm1149_vm6, %v1330_v3  ;;  %1172 = vmatprep.subr.msk.bf16.mxu1 %vm1149_vm6, %v1330_v3  ;;  %v491_v26 = vpop.permute.xlu1 %490  ;;  %vm527_vm8 = vcmp.eq.s32.totalorder %v488_v25, %v1586_v6  ;;  %vm526_vm11 = vcmp.eq.s32.totalorder %v488_v25, %v1583_v17 }
  0xa3   : > { %vm528_vm9 = vcmp.eq.s32.totalorder %v491_v26, %v1583_v17  ;;  %vm529_vm10 = vcmp.eq.s32.totalorder %v491_v26, %v1586_v6 }
  0xa4   : > { %vm1153_vm12 = vmpackc.low %vm529_vm10, %vm527_vm8 }
  0xa5   : > { %1152 = vmatpush1.bf16.msk.msra.mxu0 %vm1151_vm7, %v1330_v3  ;;  %1180 = vmatpush1.bf16.msk.msra.mxu1 %vm1151_vm7, %v1330_v3  ;;  %v494_v27 = vpop.permute.xlu0 %493  ;;  %vm1155_vm13 = vmpackc.low %vm528_vm9, %vm526_vm11 }
  0xa6   : > { %1154 = vmatprep.subr.msk.bf16.mxu0 %vm1153_vm12, %v1330_v3  ;;  %1173 = vmatprep.subr.msk.bf16.mxu1 %vm1153_vm12, %v1330_v3  ;;  %v497_v28 = vpop.permute.xlu1 %496  ;;  %vm531_vm14 = vcmp.eq.s32.totalorder %v494_v27, %v1586_v6  ;;  %vm530_vm1 = vcmp.eq.s32.totalorder %v494_v27, %v1583_v17 }
  0xa7   : > { %vm532_vm15 = vcmp.eq.s32.totalorder %v497_v28, %v1583_v17  ;;  %vm533_vm0 = vcmp.eq.s32.totalorder %v497_v28, %v1586_v6 }
  0xa8   : > { %vm1157_vm2 = vmpackc.low %vm533_vm0, %vm531_vm14 }
  0xa9   : > { %1156 = vmatpush1.bf16.msk.msra.mxu0 %vm1155_vm13, %v1330_v3  ;;  %1181 = vmatpush1.bf16.msk.msra.mxu1 %vm1155_vm13, %v1330_v3  ;;  %v500_v29 = vpop.permute.xlu0 %499  ;;  %vm1159_vm3 = vmpackc.low %vm532_vm15, %vm530_vm1 }
  0xaa   : > { %1158 = vmatprep.subr.msk.bf16.mxu0 %vm1157_vm2, %v1330_v3  ;;  %1174 = vmatprep.subr.msk.bf16.mxu1 %vm1157_vm2, %v1330_v3  ;;  %v503_v30 = vpop.permute.xlu1 %502  ;;  %vm535_vm4 = vcmp.eq.s32.totalorder %v500_v29, %v1586_v6  ;;  %vm534_vm7 = vcmp.eq.s32.totalorder %v500_v29, %v1583_v17 }
  0xab   : > { %vm536_vm5 = vcmp.eq.s32.totalorder %v503_v30, %v1583_v17  ;;  %vm537_vm6 = vcmp.eq.s32.totalorder %v503_v30, %v1586_v6 }
  0xac   : > { %vm1161_vm8 = vmpackc.low %vm537_vm6, %vm535_vm4 }
  0xad   : > { %1160 = vmatpush1.bf16.msk.msra.mxu0 %vm1159_vm3, %v1330_v3  ;;  %1182 = vmatpush1.bf16.msk.msra.mxu1 %vm1159_vm3, %v1330_v3  ;;  %v506_v31 = vpop.permute.xlu0 %505  ;;  %vm1163_vm9 = vmpackc.low %vm536_vm5, %vm534_vm7 }
  0xae   : > { %1162 = vmatprep.subr.msk.bf16.mxu0 %vm1161_vm8, %v1330_v3  ;;  %1175 = vmatprep.subr.msk.bf16.mxu1 %vm1161_vm8, %v1330_v3  ;;  %v509_v32 = vpop.permute.xlu1 %508  ;;  %vm539_vm10 = vcmp.eq.s32.totalorder %v506_v31, %v1586_v6  ;;  %vm538_vm13 = vcmp.eq.s32.totalorder %v506_v31, %v1583_v17 }
  0xaf   : > { %vm540_vm11 = vcmp.eq.s32.totalorder %v509_v32, %v1583_v17  ;;  %vm541_vm12 = vcmp.eq.s32.totalorder %v509_v32, %v1586_v6 }
  0xb0   : > { %vm1165_vm14 = vmpackc.low %vm541_vm12, %vm539_vm10 }
  0xb1   : > { %1164 = vmatpush1.bf16.msk.msra.mxu0 %vm1163_vm9, %v1330_v3  ;;  %1183 = vmatpush1.bf16.msk.msra.mxu1 %vm1163_vm9, %v1330_v3  ;;  %vm1167_vm15 = vmpackc.low %vm540_vm11, %vm538_vm13 }
  0xb2   : > { %1166 = vmatprep.subr.msk.bf16.mxu0 %vm1165_vm14, %v1330_v3  ;;  %1176 = vmatprep.subr.msk.bf16.mxu1 %vm1165_vm14, %v1330_v3 }
  0xb5   : > { %1168 = vmatpush1.bf16.msk.msra.mxu0 %vm1167_vm15, %v1330_v3  ;;  %1184 = vmatpush1.bf16.msk.msra.mxu1 %vm1167_vm15, %v1330_v3 }
 0x104   : > { %v1083_v33 = vpop.f32.mrb[0].mxu0 }
 0x105   : > { %v344_v34 = vpop.f32.mrb[1].mxu0 }
 0x106   : > { %687 = vmatmul.mubr.f32.vlgmr.msra.gmra.mrb[16].mxu0 %v344_v34 }
 0x107   : > { %692 = vmatprep.mubr.f32.mxu0 %v1329_v11 }
 0x108   : > { %v1086_v35 = vpop.f32.mrb[2].mxu0 }
 0x109   : > { %v354_v36 = vpop.f32.mrb[3].mxu0 }
 0x10a   : > { %693 = vmatmul.mubr.f32.gmra.mrb[18].mxu0 %v1083_v33 }
 0x10b   : > { %698 = vmatprep.mubr.f32.mxu0 %v1329_v11 }
 0x10c   : > { %v1089_v37 = vpop.f32.mrb[4].mxu0 }
 0x10d   : > { %v364_v38 = vpop.f32.mrb[5].mxu0 }
 0x10e   : > { %699 = vmatmul.mubr.f32.gmra.mrb[20].mxu0 %v354_v36  ;;  %711 = vmatmul.mubr.f32.vlgmr.msra.gmra.mrb[0].mxu1 %v364_v38 }
 0x10f   : > { %704 = vmatprep.mubr.f32.mxu0 %v1329_v11  ;;  %716 = vmatprep.mubr.f32.mxu1 %v1329_v11 }
 0x110   : > { %v1092_v39 = vpop.f32.mrb[6].mxu0 }
 0x111   : > { %v374_v40 = vpop.f32.mrb[7].mxu0 }
 0x112   : > { %705 = vmatmul.mubr.f32.gmra.mrb[22].mxu0 %v1086_v35  ;;  %717 = vmatmul.mubr.f32.gmra.mrb[2].mxu1 %v1089_v37 }
 0x113   : > { %722 = vmatprep.mubr.f32.mxu1 %v1329_v11 }
 0x114   : > { %v1095_v41 = vpop.f32.mrb[8].mxu0 }
 0x115   : > { %v384_v42 = vpop.f32.mrb[9].mxu0 }
 0x116   : > { %723 = vmatmul.mubr.f32.gmra.mrb[4].mxu1 %v374_v40 }
 0x117   : > { %728 = vmatprep.mubr.f32.mxu1 %v1329_v11 }
 0x118   : > { %v1098_v43 = vpop.f32.mrb[10].mxu0 }
 0x119   : > { %v394_v44 = vpop.f32.mrb[11].mxu0 }
 0x11a   : > { %729 = vmatmul.mubr.f32.gmra.mrb[6].mxu1 %v1092_v39 }
 0x11b   : > { %734 = vmatprep.mubr.f32.mxu1 %v1329_v11 }
 0x11c   : > { %v1101_v45 = vpop.f32.mrb[12].mxu0 }
 0x11d   : > { %v404_v46 = vpop.f32.mrb[13].mxu0 }
 0x11e   : > { %735 = vmatmul.mubr.f32.gmra.mrb[8].mxu1 %v384_v42 }
 0x11f   : > { %740 = vmatprep.mubr.f32.mxu1 %v1329_v11 }
 0x120   : > { %v1104_v47 = vpop.f32.mrb[14].mxu0 }
 0x121   : > { %v414_v48 = vpop.f32.mrb[15].mxu0 }
 0x122   : > { %741 = vmatmul.mubr.f32.gmra.mrb[10].mxu1 %v1095_v41 }
 0x123   : > { %746 = vmatprep.mubr.f32.mxu1 %v1329_v11 }
 0x126   : > { %747 = vmatmul.mubr.f32.gmra.mrb[12].mxu1 %v394_v44 }
 0x127   : > { %752 = vmatprep.mubr.f32.mxu1 %v1329_v11 }
 0x12a   : > { %753 = vmatmul.mubr.f32.gmra.mrb[14].mxu1 %v1098_v43 }
 0x12b   : > { %758 = vmatprep.mubr.f32.mxu1 %v1329_v11 }
 0x12e   : > { %759 = vmatmul.mubr.f32.gmra.mrb[16].mxu1 %v404_v46 }
 0x12f   : > { %764 = vmatprep.mubr.f32.mxu1 %v1329_v11 }
 0x132   : > { %765 = vmatmul.mubr.f32.gmra.mrb[18].mxu1 %v1101_v45 }
 0x133   : > { %770 = vmatprep.mubr.f32.mxu1 %v1329_v11 }
 0x136   : > { %771 = vmatmul.mubr.f32.gmra.mrb[20].mxu1 %v414_v48 }
 0x137   : > { %776 = vmatprep.mubr.f32.mxu1 %v1329_v11 }
 0x13a   : > { %777 = vmatmul.mubr.f32.gmra.mrb[22].mxu1 %v1104_v47 }
 0x1d9   : > { %v688_v49 = vpop.f32.mrb[16].mxu0 }
 0x1da   : > { %783 = vst [vmem:[%s1669_s27] sm:$0xff] %v688_v49  ;;  %v690_v50 = vpop.f32.mrb[17].mxu0 }
 0x1db   : > { %784 = vst [vmem:[%s1669_s27 + $0x8] sm:$0xff] %v690_v50 }
 0x1dd   : > { %v694_v51 = vpop.f32.mrb[18].mxu0 }
 0x1de   : > { %785 = vst [vmem:[%s1669_s27 + $0x10] sm:$0xff] %v694_v51  ;;  %v696_v52 = vpop.f32.mrb[19].mxu0 }
 0x1df   : > { %786 = vst [vmem:[%s1669_s27 + $0x18] sm:$0xff] %v696_v52 }
 0x1e1   : > { %v700_v53 = vpop.f32.mrb[20].mxu0  ;;  %v712_v54 = vpop.f32.mrb[0].mxu1 }
 0x1e2   : > { %787 = vst [vmem:[%s1669_s27 + $0x20] sm:$0xff] %v700_v53  ;;  %791 = vst [vmem:[%s1669_s27 + $0x40] sm:$0xff] %v712_v54  ;;  %v702_v55 = vpop.f32.mrb[21].mxu0  ;;  %v714_v56 = vpop.f32.mrb[1].mxu1 }
 0x1e3   : > { %788 = vst [vmem:[%s1669_s27 + $0x28] sm:$0xff] %v702_v55  ;;  %792 = vst [vmem:[%s1669_s27 + $0x48] sm:$0xff] %v714_v56 }
 0x1e5   : > { %v706_v57 = vpop.f32.mrb[22].mxu0  ;;  %v718_v58 = vpop.f32.mrb[2].mxu1 }
 0x1e6   : > { %789 = vst [vmem:[%s1669_s27 + $0x30] sm:$0xff] %v706_v57  ;;  %793 = vst [vmem:[%s1669_s27 + $0x50] sm:$0xff] %v718_v58  ;;  %v708_v59 = vpop.f32.mrb[23].mxu0  ;;  %v720_v60 = vpop.f32.mrb[3].mxu1 }
 0x1e7   : > { %790 = vst [vmem:[%s1669_s27 + $0x38] sm:$0xff] %v708_v59  ;;  %794 = vst [vmem:[%s1669_s27 + $0x58] sm:$0xff] %v720_v60 }
 0x1e9   : > { %v724_v61 = vpop.f32.mrb[4].mxu1 }
 0x1ea   : > { %795 = vst [vmem:[%s1669_s27 + $0x60] sm:$0xff] %v724_v61  ;;  %v726_v62 = vpop.f32.mrb[5].mxu1 }
 0x1eb   : > { %796 = vst [vmem:[%s1669_s27 + $0x68] sm:$0xff] %v726_v62 }
 0x1ed   : > { %v730_v63 = vpop.f32.mrb[6].mxu1 }
 0x1ee   : > { %797 = vst [vmem:[%s1669_s27 + $0x70] sm:$0xff] %v730_v63  ;;  %v732_v0 = vpop.f32.mrb[7].mxu1 }
 0x1ef   : > { %798 = vst [vmem:[%s1669_s27 + $0x78] sm:$0xff] %v732_v0 }
 0x1f1   : > { %v736_v1 = vpop.f32.mrb[8].mxu1 }
 0x1f2   : > { %799 = vst [vmem:[%s1669_s27 + $0x80] sm:$0xff] %v736_v1  ;;  %v738_v2 = vpop.f32.mrb[9].mxu1 }
 0x1f3   : > { %800 = vst [vmem:[%s1669_s27 + $0x88] sm:$0xff] %v738_v2 }
 0x1f5   : > { %v742_v4 = vpop.f32.mrb[10].mxu1 }
 0x1f6   : > { %801 = vst [vmem:[%s1669_s27 + $0x90] sm:$0xff] %v742_v4  ;;  %v744_v5 = vpop.f32.mrb[11].mxu1 }
 0x1f7   : > { %802 = vst [vmem:[%s1669_s27 + $0x98] sm:$0xff] %v744_v5 }
 0x1f9   : > { %v748_v7 = vpop.f32.mrb[12].mxu1 }
 0x1fa   : > { %803 = vst [vmem:[%s1669_s27 + $0xa0] sm:$0xff] %v748_v7  ;;  %v750_v8 = vpop.f32.mrb[13].mxu1 }
 0x1fb   : > { %804 = vst [vmem:[%s1669_s27 + $0xa8] sm:$0xff] %v750_v8 }
 0x1fd   : > { %v754_v9 = vpop.f32.mrb[14].mxu1 }
 0x1fe   : > { %805 = vst [vmem:[%s1669_s27 + $0xb0] sm:$0xff] %v754_v9  ;;  %v756_v10 = vpop.f32.mrb[15].mxu1 }
 0x1ff   : > { %806 = vst [vmem:[%s1669_s27 + $0xb8] sm:$0xff] %v756_v10 }
 0x201   : > { %v760_v12 = vpop.f32.mrb[16].mxu1 }
 0x202   : > { %807 = vst [vmem:[%s1669_s27 + $0xc0] sm:$0xff] %v760_v12  ;;  %v762_v13 = vpop.f32.mrb[17].mxu1 }
 0x203   : > { %808 = vst [vmem:[%s1669_s27 + $0xc8] sm:$0xff] %v762_v13 }
 0x205   : > { %v766_v14 = vpop.f32.mrb[18].mxu1 }
 0x206   : > { %809 = vst [vmem:[%s1669_s27 + $0xd0] sm:$0xff] %v766_v14  ;;  %v768_v16 = vpop.f32.mrb[19].mxu1 }
 0x207   : > { %810 = vst [vmem:[%s1669_s27 + $0xd8] sm:$0xff] %v768_v16 }
 0x209   : > { %v772_v11 = vpop.f32.mrb[20].mxu1  ;;  %822 = sbr.rel (!%p1394_p4) target bundleno = 556 (0x22c), region = 40 }
 0x20a   : > { %811 = vst [vmem:[%s1669_s27 + $0xe0] sm:$0xff] %v772_v11  ;;  %v774_v17 = vpop.f32.mrb[21].mxu1 }
 0x20b   : > { %812 = vst [vmem:[%s1669_s27 + $0xe8] sm:$0xff] %v774_v17 }
 0x20d   : > { %v778_v6 = vpop.f32.mrb[22].mxu1 }
 0x20e   : > { %813 = vst [vmem:[%s1669_s27 + $0xf0] sm:$0xff] %v778_v6  ;;  %v780_v18 = vpop.f32.mrb[23].mxu1 }
 0x20f   : > { %814 = vst [vmem:[%s1669_s27 + $0xf8] sm:$0xff] %v780_v18 }
 0x210   : > { %s1785_s30 = smov (!%p826_p11, %s825_s30), 16 }
 0x211   : > { %s1710_s4 = sshll.u32 %s1785_s30, 8 }
 0x212   : > { %s831_s5 = ssub.s32 4096, %s1710_s4 }
 0x213   : > { %832 = vsyncadd %s1705_s28, %s831_s5  ;;  %p1007_p12 = scmp.ne.s32.totalorder %s1710_s4, 0  ;;  %s1016_s6 = sshll.u32 %s1317_s15, 12 }
 0x214   : > { %s1719_s8 = scalar_lea.hbm %s1774_s3, %s1016_s6  ;;  %s839_s9 = sshll.u32 %s1669_s27, 4  ;;  %s1722_s9 = int_to_ptr.vmem [resolvable:$true] %s839_s9 }
 0x215   : > { %s1247_s10 = scalar_lea.vmem %s1722_s9, %s1710_s4  ;;  %s1331_s11 = smov [#allocation3]  }
 0x216   : > { %p1248_p13 = scmp.ne.s32.totalorder %s1722_s9, %s1247_s10  ;;  %s1251_s18 = sshll.u32 %s1331_s11, 4  ;;  %s1252_s18 = int_to_ptr.vmem [resolvable:$false] %s1251_s18 }
 0x217   : > { %s1253_s15 = scalar_lea.vmem %s1252_s18, 8192  ;;  %p1254_p2 = scmp.lt.s32.totalorder %s1722_s9, %s1252_s18 }
 0x218   : > { %p1249_p0 = pnand %p1248_p13, %p1007_p12  ;;  %p1255_p3 = scmp.lt.s32.totalorder %s1253_s15, %s1247_s10 }
 0x21a   : > { %p1250_p1 = pneg %p1249_p0  ;;  %p1256_p4 = por %p1255_p3, %p1254_p2 }
 0x21c   : > { %p1257_p5 = pnand %p1256_p4, %p1250_p1 }
 0x21e   : > { %1260 = shalt.err (!%p1257_p5)
}
 0x21f   : > { %s1261_s19 = scalar_lea.hbm %s1719_s8, %s1710_s4  ;;  %s1265_s26 = scalar_lea.hbm %s1774_s3, 6912 }
 0x220   : > { %p1262_p6 = scmp.ne.s32.totalorder %s1719_s8, %s1261_s19  ;;  %p1266_p10 = scmp.lt.u32.totalorder %s1719_s8, %s1774_s3 }
 0x221   : > { %p1267_p11 = scmp.lt.u32.totalorder %s1265_s26, %s1261_s19  ;;  %p1269_p0 = scmp.lt.u32.totalorder %s1261_s19, %s1719_s8 }
 0x222   : > { %p1263_p7 = pnand %p1262_p6, %p1007_p12 }
 0x223   : > { %p1268_p13 = por %p1267_p11, %p1266_p10 }
 0x224   : > { %p1264_p9 = pneg %p1263_p7 }
 0x225   : > { %p1270_p1 = por %p1269_p0, %p1268_p13 }
 0x227   : > { %p1271_p2 = pnand %p1270_p1, %p1264_p9 }
 0x229   : > { %1274 = shalt.err (!%p1271_p2)
}
 0x22a   : > { %s1332_s30 = smov 256   ;;  %s1333_s5 = smov 16  }
 0x22b   : > { %845 = dma.vmem_to_hbm [thread:$0]  (%p1007_p12), %s1722_s9, %s1710_s4, %s1719_s8, %s1705_s28, %s1332_s30, %s1332_s30, %s1333_s5  }
 0x22c PF: > { %p1190_p3 = scmp.ge.s32.totalorder %s1325_s17, 2  ;;  %s854_s6 = sand.u32 1, %s1305_s12  }
 0x22d   : > { %s855_s22 = scalar_lea.sflag [#allocation4], %s854_s6 }
 0x22e   : > { %p1187_p4 = pnand %p1190_p3, %p1401_p8 }
 0x230   : > { %1300 = dma.done.wait (!%p1187_p4), %s855_s22, 4096  }
 0x231   : > { %1302 = vsyncadd (!%p1187_p4), %s855_s22, 4294963200  ;;  %s16_s17 = sadd.s32 1, %s1325_s17   ;;  %s1777_s12 = smov %s1309_s13 }
 0x232   : > { %p13_p5 = scmp.ge.s32.totalorder %s16_s17, 4   ;;  %s1778_s13 = smov %s1313_s14 }
 0x233   : > { %s1779_s14 = smov %s1407_s25  ;;  %s1780_s15 = smov %s1321_s16 }
 0x234   : > { %s1781_s16 = smov %s1783_s20  ;;  %15 = sbr.rel (!%p13_p5) target bundleno = 4 (0x4), region = 68 }
 0x23b   :  { %860 = vsyncpa [#allocation4], 1 }
 0x23c   :  { %862 = vsyncpa [#allocation4 + $0x1], 1 }

</bundles_post_ra>
